<compile_context>
chip_gen: v6e
topology: v6e:2x2x1
jax: 0.10.0
libtpu: 0.0.40
codegen_flags: <defaults>
</compile_context>

<pallas_src>
import functools

import jax
import jax.numpy as jnp
from jax.experimental import pallas as pl
from jax.experimental.pallas import tpu as pltpu

LANE = 128  # lane width; every plane of the packed slab is (LANE, LANE) f32


def gnn_kernel(c, packed_ref, out_ref):
    # packed_ref: (4, LANE, LANE) f32
    #   [0] = A      adjacency, rows/lanes >= n are zero
    #   [1] = XP     [x | x | 1 | 0...], rows >= n are zero
    #   [2] = W1S    [W1_root^T ; W1_rel^T ; b1] stacked, outputs duplicated, bias passthrough
    #   [3] = W2S    [W2_root^T ; W2_rel^T ; b2] stacked
    a = packed_ref[0]
    xp = packed_ref[1]
    w1 = packed_ref[2]
    w2 = packed_ref[3]

    # Row-invariant lane mask, computed once as (1, LANE) and broadcast in the selects:
    # lanes [0:c) and lane 2c come from the "self" slab, everything else from the aggregate.
    lane = jax.lax.broadcasted_iota(jnp.int32, (1, LANE), 1)
    keep_self = (lane < c) | (lane == 2 * c)

    # ---- layer 1: GraphConv + ReLU (one aggregation dot + one fused weight dot) ----
    agg1 = jnp.dot(a, xp, preferred_element_type=jnp.float32)   # [A@x | A@x | deg | 0...]
    f1 = jnp.where(keep_self, xp, agg1)                         # [x   | A@x | 1   | 0...]
    h = jnp.dot(f1, w1, preferred_element_type=jnp.float32)
    h = jnp.maximum(h, 0.0)                                     # [h   | h   | 1   | 0...]

    # ---- layer 2: GraphConv (no activation) ----
    agg2 = jnp.dot(a, h, preferred_element_type=jnp.float32)    # [A@h | A@h | deg | 0...]
    f2 = jnp.where(keep_self, h, agg2)                          # [h   | A@h | 1   | 0...]
    out = jnp.dot(f2, w2, preferred_element_type=jnp.float32)
    out_ref[...] = out.astype(out_ref.dtype)                    # [out | 0...] lane-dense store


def _stacked_weights(w_rel, w_root, b, duplicate_out, bias_passthrough):
    """Stack [W_root^T; W_rel^T; b] into one (LANE, LANE) fused weight matrix."""
    c = w_rel.shape[0]
    block = jnp.concatenate(
        [w_root.T.astype(jnp.float32),
         w_rel.T.astype(jnp.float32),
         b.reshape(1, c).astype(jnp.float32)],
        axis=0,
    )  # (2c+1, c)
    ws = jnp.zeros((LANE, LANE), jnp.float32)
    ws = ws.at[: 2 * c + 1, :c].set(block)
    if duplicate_out:                       # duplicate output cols so one A@h dot serves layer 2
        ws = ws.at[: 2 * c + 1, c : 2 * c].set(block)
    if bias_passthrough:                    # keep the "1" bias column alive for the next layer
        ws = ws.at[2 * c, 2 * c].set(1.0)
    return ws


def gnn_forward(x, edge_index, params):
    """x: [N, C] float32 node features; edge_index: [2, E] int32 (src, dst)."""
    n, c = x.shape
    assert n <= LANE and 2 * c + 1 <= LANE, "single-block fast path; tile for larger N/C"

    src, dst = edge_index[0], edge_index[1]

    # Wrapper-side glue: one lane-dense packed slab -> one input DMA.
    packed = jnp.zeros((4, LANE, LANE), jnp.float32)
    packed = packed.at[0, dst, src].add(1.0)          # dense adjacency A[dst, src] += 1
    packed = packed.at[1, :n, :c].set(x)              # root path
    packed = packed.at[1, :n, c : 2 * c].set(x)       # duplicate copy -> one A@slab dot serves both paths
    packed = packed.at[1, :n, 2 * c].set(1.0)         # bias column
    packed = packed.at[2].set(
        _stacked_weights(params["w1_rel"], params["w1_root"], params["b1"],
                         duplicate_out=True, bias_passthrough=True))
    packed = packed.at[3].set(
        _stacked_weights(params["w2_rel"], params["w2_root"], params["b2"],
                         duplicate_out=False, bias_passthrough=False))

    vmem = pl.BlockSpec(memory_space=pltpu.MemorySpace.VMEM)
    out_pad = pl.pallas_call(
        functools.partial(gnn_kernel, c),
        out_shape=jax.ShapeDtypeStruct((LANE, LANE), jnp.float32),
        in_specs=[vmem],
        out_specs=vmem,
    )(packed)
    return out_pad[:n, :c]


def gnn_reference(x, edge_index, params):
    """Plain-JAX reference matching torch_geometric GraphConv semantics."""
    n, _ = x.shape
    src, dst = edge_index[0], edge_index[1]
    adj = jnp.zeros((n, n), jnp.float32).at[dst, src].add(1.0)

    h = adj @ x @ params["w1_rel"].T + x @ params["w1_root"].T + params["b1"]
    h = jnp.maximum(h, 0.0)
    out = adj @ h @ params["w2_rel"].T + h @ params["w2_root"].T + params["b2"]
    return out


if __name__ == "__main__":
    hidden_channels = 32
    num_nodes = 16

    key = jax.random.PRNGKey(0)
    kx, k1, k2, k3, k4, k5, k6 = jax.random.split(key, 7)

    # Deterministic synthetic parameters; PyTorch Linear stores W as (out, in).
    scale = 1.0 / jnp.sqrt(hidden_channels)
    params = {
        "w1_rel":  jax.random.uniform(k1, (hidden_channels, hidden_channels),
                                      jnp.float32, -scale, scale),
        "w1_root": jax.random.uniform(k2, (hidden_channels, hidden_channels),
                                      jnp.float32, -scale, scale),
        "b1":      jax.random.uniform(k3, (hidden_channels,), jnp.float32, -scale, scale),
        "w2_rel":  jax.random.uniform(k4, (hidden_channels, hidden_channels),
                                      jnp.float32, -scale, scale),
        "w2_root": jax.random.uniform(k5, (hidden_channels, hidden_channels),
                                      jnp.float32, -scale, scale),
        "b2":      jax.random.uniform(k6, (hidden_channels,), jnp.float32, -scale, scale),
    }

    x = jax.random.normal(kx, (num_nodes, hidden_channels), jnp.float32)

    # Simple deterministic graph: directed ring plus short skips.
    srcs = jnp.arange(num_nodes, dtype=jnp.int32)
    ring_dst = (srcs + 1) % num_nodes
    skip_dst = (srcs + 3) % num_nodes
    edge_index = jnp.stack([jnp.concatenate([srcs, srcs]),
                            jnp.concatenate([ring_dst, skip_dst])], axis=0)

    out = gnn_forward(x, edge_index, params)
    out = jax.block_until_ready(out)

    ref = gnn_reference(x, edge_index, params)
    assert out.shape == (num_nodes, hidden_channels)
    assert jnp.allclose(out, ref, atol=1e-4, rtol=1e-4), "Pallas output mismatch vs reference"

    print("KERNEL_OK")
</pallas_src>

<mosaic_0001>
module attributes {stable_mosaic.version = 11 : i64} {
  func.func @gnn_kernel(%arg0: memref<4x128x128xf32, #tpu.memory_space<vmem>>, %arg1: memref<128x128xf32, #tpu.memory_space<vmem>>) attributes {dimension_semantics = [], scalar_prefetch = 0 : i64, scratch_operands = 0 : i64, tpu.core_type = #tpu.core_type<tc>} {
    %c0 = arith.constant 0 : index
    %c0_0 = arith.constant 0 : index
    %c0_1 = arith.constant 0 : index
    %0 = vector.load %arg0[%c0, %c0_0, %c0_1] : memref<4x128x128xf32, #tpu.memory_space<vmem>>, vector<1x128x128xf32>
    %1 = vector.shape_cast %0 : vector<1x128x128xf32> to vector<128x128xf32>
    %c1 = arith.constant 1 : index
    %c0_2 = arith.constant 0 : index
    %c0_3 = arith.constant 0 : index
    %2 = vector.load %arg0[%c1, %c0_2, %c0_3] : memref<4x128x128xf32, #tpu.memory_space<vmem>>, vector<1x128x128xf32>
    %3 = vector.shape_cast %2 : vector<1x128x128xf32> to vector<128x128xf32>
    %c2 = arith.constant 2 : index
    %c0_4 = arith.constant 0 : index
    %c0_5 = arith.constant 0 : index
    %4 = vector.load %arg0[%c2, %c0_4, %c0_5] : memref<4x128x128xf32, #tpu.memory_space<vmem>>, vector<1x128x128xf32>
    %5 = vector.shape_cast %4 : vector<1x128x128xf32> to vector<128x128xf32>
    %c3 = arith.constant 3 : index
    %c0_6 = arith.constant 0 : index
    %c0_7 = arith.constant 0 : index
    %6 = vector.load %arg0[%c3, %c0_6, %c0_7] : memref<4x128x128xf32, #tpu.memory_space<vmem>>, vector<1x128x128xf32>
    %7 = vector.shape_cast %6 : vector<1x128x128xf32> to vector<128x128xf32>
    %8 = tpu.iota {dimensions = array<i32: 1>} : vector<1x128xi32>
    %c32_i32 = arith.constant 32 : i32
    %9 = vector.broadcast %c32_i32 : i32 to vector<1x128xi32>
    %10 = arith.cmpi slt, %8, %9 : vector<1x128xi32>
    %c64_i32 = arith.constant 64 : i32
    %11 = vector.broadcast %c64_i32 : i32 to vector<1x128xi32>
    %12 = arith.cmpi eq, %8, %11 : vector<1x128xi32>
    %13 = arith.ori %10, %12 : vector<1x128xi1>
    %cst = arith.constant dense<0.000000e+00> : vector<128x128xf32>
    %14 = tpu.matmul %1, %3, %cst {dimension_numbers = #tpu.dot_dimension_numbers<[1], [0], [0], [1], [0, 0, 1, 1], [], []>} : vector<128x128xf32>, vector<128x128xf32>, vector<128x128xf32> -> vector<128x128xf32>
    %15 = vector.shape_cast %13 : vector<1x128xi1> to vector<1x128xi1>
    %16 = vector.broadcast %15 : vector<1x128xi1> to vector<128x128xi1>
    %17 = arith.select %16, %3, %14 : vector<128x128xi1>, vector<128x128xf32>
    %cst_8 = arith.constant dense<0.000000e+00> : vector<128x128xf32>
    %18 = tpu.matmul %17, %5, %cst_8 {dimension_numbers = #tpu.dot_dimension_numbers<[1], [0], [0], [1], [0, 0, 1, 1], [], []>} : vector<128x128xf32>, vector<128x128xf32>, vector<128x128xf32> -> vector<128x128xf32>
    %cst_9 = arith.constant 0.000000e+00 : f32
    %19 = vector.broadcast %cst_9 : f32 to vector<128x128xf32>
    %20 = arith.maximumf %18, %19 : vector<128x128xf32>
    %cst_10 = arith.constant dense<0.000000e+00> : vector<128x128xf32>
    %21 = tpu.matmul %1, %20, %cst_10 {dimension_numbers = #tpu.dot_dimension_numbers<[1], [0], [0], [1], [0, 0, 1, 1], [], []>} : vector<128x128xf32>, vector<128x128xf32>, vector<128x128xf32> -> vector<128x128xf32>
    %22 = vector.shape_cast %13 : vector<1x128xi1> to vector<1x128xi1>
    %23 = vector.broadcast %22 : vector<1x128xi1> to vector<128x128xi1>
    %24 = arith.select %23, %20, %21 : vector<128x128xi1>, vector<128x128xf32>
    %cst_11 = arith.constant dense<0.000000e+00> : vector<128x128xf32>
    %25 = tpu.matmul %24, %7, %cst_11 {dimension_numbers = #tpu.dot_dimension_numbers<[1], [0], [0], [1], [0, 0, 1, 1], [], []>} : vector<128x128xf32>, vector<128x128xf32>, vector<128x128xf32> -> vector<128x128xf32>
    %c0_12 = arith.constant 0 : index
    %c0_13 = arith.constant 0 : index
    %26 = vector.load %arg1[%c0_12, %c0_13] : memref<128x128xf32, #tpu.memory_space<vmem>>, vector<128x128xf32>
    tpu.vector_store %arg1[%c0_12, %c0_13], %25 {strides = array<i32>} : memref<128x128xf32, #tpu.memory_space<vmem>>, vector<128x128xf32>,
    return
  }
}

</mosaic_0001>

<bundles_post_ra>
// kernel: tpu_custom_call.1
= control target key start
LH: loop header
LB: loop body
LE: loop exit
PB: predicated region body
PF: predicated region fallthrough
CT: control target
= control target key end

     0   :  { %6 = vsyncpa [#allocation3], 0  ;;  %s1446_s0 = inlined_call_operand.hbm [shape: f32[4,128,128], index: 0, kind: input, shape index: {}]   ;;  %s1447_s1 = inlined_call_operand.hbm [shape: f32[128,128], index: 1, kind: output, shape index: {}]  }
   0x1   :  { %7 = vsyncpa [#allocation4], 0  ;;  %s1158_s6 = smov [#allocation2]  }
   0x2   :  { %s13_s7 = sshll.u32 %s1158_s6, 4  ;;  %s14_s7 = int_to_ptr.vmem [resolvable:$true] %s13_s7 }
   0x3   :  { %s1122_s8 = scalar_lea.vmem %s14_s7, 8192  ;;  %p1127_p1 = scmp.lt.s32.totalorder %s14_s7, %s14_s7 }
   0x4   :  { %p1123_p0 = scmp.ne.s32.totalorder %s14_s7, %s1122_s8  ;;  %p1128_p2 = scmp.lt.s32.totalorder %s1122_s8, %s1122_s8 }
   0x6   :  { %p1129_p3 = por %p1128_p2, %p1127_p1 }
   0x8   :  { %p1130_p4 = pnand %p1129_p3, %p1123_p0 }
   0xa   :  { %1133 = shalt.err (!%p1130_p4)
}
   0xb   :  { %s1159_s9 = smov 128   ;;  %s1160_s10 = smov 8  }
   0xc   :  { %19 = dma.hbm_to_vmem [thread:$0]  %s1446_s0, 8192, %s14_s7, [#allocation3], %s1159_s9, %s1159_s9, %s1160_s10  }
   0xd   :  { %1154 = dma.done.wait [#allocation3], 8192  }
   0xe   :  { %1155 = vsyncadd [#allocation3], 4294959104  ;;  %v1178_v0 = vld [vmem:[#allocation2 + $0xf8] sm:$0xff]  ;;  %v1180_v1 = vld [vmem:[#allocation2 + $0xf0] sm:$0xff]  ;;  %v90_v48 = vlaneseq  ;;  %s1161_s0 = smov [#allocation5]  }
   0xf   :  { %886 = vmatprep.subr.mxu0 %v1178_v0  ;;  %v1184_v2 = vld [vmem:[#allocation2 + $0xe8] sm:$0xff]  ;;  %v1188_v3 = vld [vmem:[#allocation2 + $0xe0] sm:$0xff]  ;;  %v1194_v5 = vld [vmem:[#allocation2 + $0xd8] sm:$0xff]  ;;  %s746_s13 = sshll.u32 %s1161_s0, 4  ;;  %s747_s13 = int_to_ptr.vmem [resolvable:$true] %s746_s13 }
  0x10   :  { %887 = vmatpush3.msra.mxu0 %v1178_v0  ;;  %v1191_v4 = vld [vmem:[#allocation2] sm:$0xff]  ;;  %v1199_v6 = vld [vmem:[#allocation2 + $0xd0] sm:$0xff]  ;;  %v1203_v7 = vld [vmem:[#allocation2 + $0xc8] sm:$0xff]  ;;  %v91_v49 = vand.u32 127, %v90_v48  ;;  %s1134_s14 = scalar_lea.vmem %s747_s13, 2048  ;;  %p1139_p6 = scmp.lt.s32.totalorder %s747_s13, %s747_s13 }
  0x11   :  { %888 = vmatprep.subr.mxu0 %v1180_v1  ;;  %918 = vmatprep.mubr.f32.mxu0 %v1191_v4  ;;  %v72_v8 = vld [vmem:[#allocation2 + $0x178] sm:$0xff]  ;;  %v71_v9 = vld [vmem:[#allocation2 + $0x170] sm:$0xff]  ;;  %v1207_v10 = vld [vmem:[#allocation2 + $0xc0] sm:$0xff]  ;;  %p1135_p5 = scmp.ne.s32.totalorder %s747_s13, %s1134_s14  ;;  %p1140_p7 = scmp.lt.s32.totalorder %s1134_s14, %s1134_s14 }
  0x12   :  { %889 = vmatpush3.msra.mxu0 %v1180_v1  ;;  %942 = vmatprep.subr.mxu1 %v72_v8  ;;  %v70_v11 = vld [vmem:[#allocation2 + $0x168] sm:$0xff]  ;;  %v1211_v12 = vld [vmem:[#allocation2 + $0xb8] sm:$0xff]  ;;  %v69_v13 = vld [vmem:[#allocation2 + $0x160] sm:$0xff]  ;;  %vm92_vm0 = vcmp.lt.s32.totalorder %v91_v49, 32  ;;  %vm93_vm1 = vcmp.eq.s32.totalorder %v91_v49, 64 }
  0x13   :  { %890 = vmatprep.subr.mxu0 %v1184_v2  ;;  %943 = vmatpush3.msra.mxu1 %v72_v8  ;;  %v1215_v14 = vld [vmem:[#allocation2 + $0xb0] sm:$0xff]  ;;  %v68_v15 = vld [vmem:[#allocation2 + $0x158] sm:$0xff]  ;;  %v1219_v16 = vld [vmem:[#allocation2 + $0xa8] sm:$0xff]  ;;  %p1141_p8 = por %p1140_p7, %p1139_p6 }
  0x14   :  { %891 = vmatpush3.msra.mxu0 %v1184_v2  ;;  %944 = vmatprep.subr.mxu1 %v71_v9  ;;  %v67_v17 = vld [vmem:[#allocation2 + $0x150] sm:$0xff]  ;;  %v1223_v18 = vld [vmem:[#allocation2 + $0xa0] sm:$0xff]  ;;  %v66_v19 = vld [vmem:[#allocation2 + $0x148] sm:$0xff] }
  0x15   :  { %892 = vmatprep.subr.mxu0 %v1188_v3  ;;  %945 = vmatpush3.msra.mxu1 %v71_v9  ;;  %v1227_v20 = vld [vmem:[#allocation2 + $0x98] sm:$0xff]  ;;  %v65_v21 = vld [vmem:[#allocation2 + $0x140] sm:$0xff]  ;;  %v1231_v22 = vld [vmem:[#allocation2 + $0x90] sm:$0xff]  ;;  %p1142_p9 = pnand %p1141_p8, %p1135_p5 }
  0x16   :  { %893 = vmatpush3.msra.mxu0 %v1188_v3  ;;  %946 = vmatprep.subr.mxu1 %v70_v11  ;;  %v64_v23 = vld [vmem:[#allocation2 + $0x138] sm:$0xff]  ;;  %v1235_v24 = vld [vmem:[#allocation2 + $0x88] sm:$0xff]  ;;  %v63_v25 = vld [vmem:[#allocation2 + $0x130] sm:$0xff] }
  0x17   :  { %894 = vmatprep.subr.mxu0 %v1194_v5  ;;  %947 = vmatpush3.msra.mxu1 %v70_v11  ;;  %v1239_v26 = vld [vmem:[#allocation2 + $0x80] sm:$0xff]  ;;  %v62_v27 = vld [vmem:[#allocation2 + $0x128] sm:$0xff]  ;;  %v1246_v30 = vld [vmem:[#allocation2 + $0x10] sm:$0xff] }
  0x18   :  { %895 = vmatpush3.msra.mxu0 %v1194_v5  ;;  %948 = vmatprep.subr.mxu1 %v69_v13  ;;  %v1243_v28 = vld [vmem:[#allocation2 + $0x8] sm:$0xff]  ;;  %v61_v29 = vld [vmem:[#allocation2 + $0x120] sm:$0xff]  ;;  %v60_v31 = vld [vmem:[#allocation2 + $0x118] sm:$0xff] }
  0x19   :  { %896 = vmatprep.subr.mxu0 %v1199_v6  ;;  %949 = vmatpush3.msra.mxu1 %v69_v13  ;;  %v1251_v32 = vld [vmem:[#allocation2 + $0x18] sm:$0xff]  ;;  %v59_v33 = vld [vmem:[#allocation2 + $0x110] sm:$0xff]  ;;  %v1253_v34 = vld [vmem:[#allocation2 + $0x20] sm:$0xff] }
  0x1a   :  { %897 = vmatpush3.msra.mxu0 %v1199_v6  ;;  %950 = vmatprep.subr.mxu1 %v68_v15  ;;  %v1257_v35 = vld [vmem:[#allocation2 + $0x28] sm:$0xff]  ;;  %v1259_v36 = vld [vmem:[#allocation2 + $0x30] sm:$0xff]  ;;  %v1263_v37 = vld [vmem:[#allocation2 + $0x38] sm:$0xff] }
  0x1b   :  { %898 = vmatprep.subr.mxu0 %v1203_v7  ;;  %951 = vmatpush3.msra.mxu1 %v68_v15  ;;  %v1265_v38 = vld [vmem:[#allocation2 + $0x40] sm:$0xff]  ;;  %v1269_v39 = vld [vmem:[#allocation2 + $0x48] sm:$0xff]  ;;  %v1271_v40 = vld [vmem:[#allocation2 + $0x50] sm:$0xff] }
  0x1c   :  { %899 = vmatpush3.msra.mxu0 %v1203_v7  ;;  %952 = vmatprep.subr.mxu1 %v67_v17  ;;  %v1275_v41 = vld [vmem:[#allocation2 + $0x58] sm:$0xff]  ;;  %v1277_v42 = vld [vmem:[#allocation2 + $0x60] sm:$0xff]  ;;  %v1281_v43 = vld [vmem:[#allocation2 + $0x68] sm:$0xff] }
  0x1d   :  { %900 = vmatprep.subr.mxu0 %v1207_v10  ;;  %953 = vmatpush3.msra.mxu1 %v67_v17  ;;  %v1283_v44 = vld [vmem:[#allocation2 + $0x70] sm:$0xff]  ;;  %v1287_v45 = vld [vmem:[#allocation2 + $0x78] sm:$0xff]  ;;  %v58_v46 = vld [vmem:[#allocation2 + $0x108] sm:$0xff] }
  0x1e   :  { %901 = vmatpush3.msra.mxu0 %v1207_v10  ;;  %954 = vmatprep.subr.mxu1 %v66_v19  ;;  %v57_v47 = vld [vmem:[#allocation2 + $0x100] sm:$0xff]  ;;  %vm1291_vm2 = vmor %vm92_vm0, %vm93_vm1 }
  0x1f   :  { %902 = vmatprep.subr.mxu0 %v1211_v12  ;;  %955 = vmatpush3.msra.mxu1 %v66_v19 }
  0x20   :  { %903 = vmatpush3.msra.mxu0 %v1211_v12  ;;  %956 = vmatprep.subr.mxu1 %v65_v21 }
  0x21   :  { %904 = vmatprep.subr.mxu0 %v1215_v14  ;;  %957 = vmatpush3.msra.mxu1 %v65_v21 }
  0x22   :  { %905 = vmatpush3.msra.mxu0 %v1215_v14  ;;  %958 = vmatprep.subr.mxu1 %v64_v23 }
  0x23   :  { %906 = vmatprep.subr.mxu0 %v1219_v16  ;;  %959 = vmatpush3.msra.mxu1 %v64_v23  ;;  %v89_v23 = vld [vmem:[#allocation2 + $0x1f8] sm:$0xff] }
  0x24   :  { %907 = vmatpush3.msra.mxu0 %v1219_v16  ;;  %960 = vmatprep.subr.mxu1 %v63_v25 }
  0x25   :  { %908 = vmatprep.subr.mxu0 %v1223_v18  ;;  %961 = vmatpush3.msra.mxu1 %v63_v25  ;;  %v85_v25 = vld [vmem:[#allocation2 + $0x1d8] sm:$0xff] }
  0x26   :  { %909 = vmatpush3.msra.mxu0 %v1223_v18  ;;  %962 = vmatprep.subr.mxu1 %v62_v27 }
  0x27   :  { %910 = vmatprep.subr.mxu0 %v1227_v20  ;;  %963 = vmatpush3.msra.mxu1 %v62_v27  ;;  %v81_v27 = vld [vmem:[#allocation2 + $0x1b8] sm:$0xff] }
  0x28   :  { %911 = vmatpush3.msra.mxu0 %v1227_v20  ;;  %964 = vmatprep.subr.mxu1 %v61_v29 }
  0x29   :  { %912 = vmatprep.subr.mxu0 %v1231_v22  ;;  %965 = vmatpush3.msra.mxu1 %v61_v29  ;;  %v80_v29 = vld [vmem:[#allocation2 + $0x1b0] sm:$0xff] }
  0x2a   :  { %913 = vmatpush3.msra.mxu0 %v1231_v22  ;;  %966 = vmatprep.subr.mxu1 %v60_v31 }
  0x2b   :  { %914 = vmatprep.subr.mxu0 %v1235_v24  ;;  %967 = vmatpush3.msra.mxu1 %v60_v31  ;;  %v79_v31 = vld [vmem:[#allocation2 + $0x1a8] sm:$0xff] }
  0x2c   :  { %915 = vmatpush3.msra.mxu0 %v1235_v24  ;;  %968 = vmatprep.subr.mxu1 %v59_v33 }
  0x2d   :  { %916 = vmatprep.subr.mxu0 %v1239_v26  ;;  %969 = vmatpush3.msra.mxu1 %v59_v33  ;;  %v78_v33 = vld [vmem:[#allocation2 + $0x1a0] sm:$0xff] }
  0x2e   :  { %917 = vmatpush3.msra.mxu0 %v1239_v26  ;;  %970 = vmatprep.subr.mxu1 %v58_v46 }
  0x2f   :  { %919 = vmatmul.mubr.f32.vlgmr.msra.gmra.mxu0 %v1243_v28  ;;  %971 = vmatpush3.msra.mxu1 %v58_v46  ;;  %v77_v46 = vld [vmem:[#allocation2 + $0x198] sm:$0xff] }
  0x30   :  { %921 = vmatprep.mubr.f32.mxu0 %v1246_v30  ;;  %972 = vmatprep.subr.mxu1 %v57_v47 }
  0x31   :  { %973 = vmatpush3.msra.mxu1 %v57_v47  ;;  %v76_v47 = vld [vmem:[#allocation2 + $0x190] sm:$0xff] }
  0x32   :  { %1054 = vmatprep.subr.mxu1 %v89_v23 }
  0x33   :  { %922 = vmatmul.mubr.f32.gmra.mxu0 %v1251_v32 }
  0x34   :  { %924 = vmatprep.mubr.f32.mxu0 %v1253_v34 }
  0x37   :  { %925 = vmatmul.mubr.f32.gmra.mxu0 %v1257_v35 }
  0x38   :  { %927 = vmatprep.mubr.f32.mxu0 %v1259_v36 }
  0x3b   :  { %928 = vmatmul.mubr.f32.gmra.mxu0 %v1263_v37 }
  0x3c   :  { %930 = vmatprep.mubr.f32.mxu0 %v1265_v38 }
  0x3f   :  { %931 = vmatmul.mubr.f32.gmra.mxu0 %v1269_v39 }
  0x40   :  { %933 = vmatprep.mubr.f32.mxu0 %v1271_v40 }
  0x43   :  { %934 = vmatmul.mubr.f32.gmra.mxu0 %v1275_v41 }
  0x44   :  { %936 = vmatprep.mubr.f32.mxu0 %v1277_v42 }
  0x47   :  { %937 = vmatmul.mubr.f32.gmra.mxu0 %v1281_v43 }
  0x48   :  { %939 = vmatprep.mubr.f32.mxu0 %v1283_v44 }
  0x4b   :  { %940 = vmatmul.mubr.f32.gmra.mxu0 %v1287_v45 }
  0x4c   :  { %1030 = vmatprep.mubr.f32.mxu0 %v1191_v4 }
  0xef   :  { %v920_v50 = vpop.f32.mrf.mxu0 }
  0xf0   :  { %v243_v55 = vsel %vm1291_vm2, %v1235_v24, %v920_v50  ;;  %v87_v24 = vld [vmem:[#allocation2 + $0x1e8] sm:$0xff] }
  0xf1   :  { %v161_v52 = vpop.f32.mrf.mxu0 }
  0xf2   :  { %v242_v53 = vsel %vm1291_vm2, %v1239_v26, %v161_v52  ;;  %v83_v26 = vld [vmem:[#allocation2 + $0x1c8] sm:$0xff] }
  0xf3   :  { %v923_v54 = vpop.f32.mrf.mxu0  ;;  %974 = vmatprep.mubr.f32.mxu1 %v242_v53 }
  0xf4   :  { %975 = vmatmul.mubr.f32.vlgmr.msra.gmra.mxu1 %v243_v55  ;;  %v245_v59 = vsel %vm1291_vm2, %v1227_v20, %v923_v54 }
  0xf5   :  { %v171_v56 = vpop.f32.mrf.mxu0  ;;  %1055 = vmatpush3.msra.mxu1 %v89_v23 }
  0xf6   :  { %v244_v57 = vsel %vm1291_vm2, %v1231_v22, %v171_v56 }
  0xf7   :  { %v926_v58 = vpop.f32.mrf.mxu0  ;;  %977 = vmatprep.mubr.f32.mxu1 %v244_v57 }
  0xf8   :  { %978 = vmatmul.mubr.f32.gmra.mxu1 %v245_v59  ;;  %v247_v63 = vsel %vm1291_vm2, %v1219_v16, %v926_v58 }
  0xf9   :  { %v181_v60 = vpop.f32.mrf.mxu0 }
  0xfa   :  { %v246_v61 = vsel %vm1291_vm2, %v1223_v18, %v181_v60 }
  0xfb   :  { %v929_v62 = vpop.f32.mrf.mxu0  ;;  %980 = vmatprep.mubr.f32.mxu1 %v246_v61 }
  0xfc   :  { %981 = vmatmul.mubr.f32.gmra.mxu1 %v247_v63  ;;  %v249_v11 = vsel %vm1291_vm2, %v1211_v12, %v929_v62 }
  0xfd   :  { %v191_v4 = vpop.f32.mrf.mxu0 }
  0xfe   :  { %v248_v8 = vsel %vm1291_vm2, %v1215_v14, %v191_v4 }
  0xff   :  { %v932_v9 = vpop.f32.mrf.mxu0  ;;  %983 = vmatprep.mubr.f32.mxu1 %v248_v8 }
 0x100   :  { %984 = vmatmul.mubr.f32.gmra.mxu1 %v249_v11  ;;  %v251_v16 = vsel %vm1291_vm2, %v1203_v7, %v932_v9 }
 0x101   :  { %v201_v13 = vpop.f32.mrf.mxu0 }
 0x102   :  { %v250_v15 = vsel %vm1291_vm2, %v1207_v10, %v201_v13 }
 0x103   :  { %v935_v17 = vpop.f32.mrf.mxu0  ;;  %986 = vmatprep.mubr.f32.mxu1 %v250_v15 }
 0x104   :  { %987 = vmatmul.mubr.f32.gmra.mxu1 %v251_v16  ;;  %v253_v12 = vsel %vm1291_vm2, %v1194_v5, %v935_v17 }
 0x105   :  { %v211_v14 = vpop.f32.mrf.mxu0 }
 0x106   :  { %v252_v18 = vsel %vm1291_vm2, %v1199_v6, %v211_v14 }
 0x107   :  { %v938_v19 = vpop.f32.mrf.mxu0  ;;  %989 = vmatprep.mubr.f32.mxu1 %v252_v18 }
 0x108   :  { %990 = vmatmul.mubr.f32.gmra.mxu1 %v253_v12  ;;  %v255_v7 = vsel %vm1291_vm2, %v1184_v2, %v938_v19  ;;  %v86_v2 = vld [vmem:[#allocation2 + $0x1e0] sm:$0xff] }
 0x109   :  { %v221_v10 = vpop.f32.mrf.mxu0 }
 0x10a   :  { %v254_v20 = vsel %vm1291_vm2, %v1188_v3, %v221_v10  ;;  %v88_v3 = vld [vmem:[#allocation2 + $0x1f0] sm:$0xff] }
 0x10b   :  { %v941_v21 = vpop.f32.mrf.mxu0  ;;  %992 = vmatprep.mubr.f32.mxu1 %v254_v20  ;;  %1056 = vmatprep.subr.mxu1 %v88_v3 }
 0x10c   :  { %993 = vmatmul.mubr.f32.gmra.mxu1 %v255_v7  ;;  %v257_v5 = vsel %vm1291_vm2, %v1178_v0, %v941_v21  ;;  %v82_v0 = vld [vmem:[#allocation2 + $0x1c0] sm:$0xff] }
 0x10d   :  { %v231_v6 = vpop.f32.mrf.mxu0  ;;  %1057 = vmatpush3.msra.mxu1 %v88_v3 }
 0x10e   :  { %v256_v22 = vsel %vm1291_vm2, %v1180_v1, %v231_v6  ;;  %1058 = vmatprep.subr.mxu1 %v87_v24  ;;  %v84_v1 = vld [vmem:[#allocation2 + $0x1d0] sm:$0xff] }
 0x10f   :  { %995 = vmatprep.mubr.f32.mxu1 %v256_v22  ;;  %1059 = vmatpush3.msra.mxu1 %v87_v24 }
 0x110   :  { %996 = vmatmul.mubr.f32.gmra.mxu1 %v257_v5  ;;  %1060 = vmatprep.subr.mxu1 %v86_v2 }
 0x111   :  { %1061 = vmatpush3.msra.mxu1 %v86_v2 }
 0x112   :  { %1062 = vmatprep.subr.mxu1 %v85_v25 }
 0x113   :  { %1063 = vmatpush3.msra.mxu1 %v85_v25 }
 0x114   :  { %1064 = vmatprep.subr.mxu1 %v84_v1 }
 0x115   :  { %1065 = vmatpush3.msra.mxu1 %v84_v1 }
 0x116   :  { %1066 = vmatprep.subr.mxu1 %v83_v26 }
 0x117   :  { %1067 = vmatpush3.msra.mxu1 %v83_v26 }
 0x118   :  { %1068 = vmatprep.subr.mxu1 %v82_v0 }
 0x119   :  { %1069 = vmatpush3.msra.mxu1 %v82_v0 }
 0x11a   :  { %1070 = vmatprep.subr.mxu1 %v81_v27 }
 0x11b   :  { %1071 = vmatpush3.msra.mxu1 %v81_v27 }
 0x11c   :  { %1072 = vmatprep.subr.mxu1 %v80_v29 }
 0x11d   :  { %1073 = vmatpush3.msra.mxu1 %v80_v29 }
 0x11e   :  { %1074 = vmatprep.subr.mxu1 %v79_v31 }
 0x11f   :  { %1075 = vmatpush3.msra.mxu1 %v79_v31 }
 0x120   :  { %1076 = vmatprep.subr.mxu1 %v78_v33 }
 0x121   :  { %1077 = vmatpush3.msra.mxu1 %v78_v33 }
 0x122   :  { %1078 = vmatprep.subr.mxu1 %v77_v46 }
 0x123   :  { %1079 = vmatpush3.msra.mxu1 %v77_v46 }
 0x124   :  { %1080 = vmatprep.subr.mxu1 %v76_v47 }
 0x125   :  { %1081 = vmatpush3.msra.mxu1 %v76_v47 }
 0x1b4   :  { %v976_v48 = vpop.f32.mrf.mxu1 }
 0x1b5   :  { %v404_v7 = vmax.f32 %v976_v48, 0.0 }
 0x1b6   :  { %v324_v49 = vpop.f32.mrf.mxu1 }
 0x1b7   :  { %v403_v6 = vmax.f32 %v324_v49, 0.0 }
 0x1b8   :  { %v979_v50 = vpop.f32.mrf.mxu1 }
 0x1b9   :  { %v406_v20 = vmax.f32 %v979_v50, 0.0 }
 0x1ba   :  { %v334_v52 = vpop.f32.mrf.mxu1 }
 0x1bb   :  { %v405_v21 = vmax.f32 %v334_v52, 0.0 }
 0x1bc   :  { %v982_v53 = vpop.f32.mrf.mxu1 }
 0x1bd   :  { %v408_v12 = vmax.f32 %v982_v53, 0.0 }
 0x1be   :  { %v344_v54 = vpop.f32.mrf.mxu1 }
 0x1bf   :  { %v407_v10 = vmax.f32 %v344_v54, 0.0 }
 0x1c0   :  { %v985_v55 = vpop.f32.mrf.mxu1 }
 0x1c1   :  { %v1373_v18 = vmax.f32 %v985_v55, 0.0 }
 0x1c2   :  { %v354_v56 = vpop.f32.mrf.mxu1 }
 0x1c3   :  { %v1377_v19 = vmax.f32 %v354_v56, 0.0 }
 0x1c4   :  { %v988_v57 = vpop.f32.mrf.mxu1 }
 0x1c5   :  { %v1365_v16 = vmax.f32 %v988_v57, 0.0 }
 0x1c6   :  { %v364_v58 = vpop.f32.mrf.mxu1 }
 0x1c7   :  { %v1369_v14 = vmax.f32 %v364_v58, 0.0 }
 0x1c8   :  { %v991_v59 = vpop.f32.mrf.mxu1 }
 0x1c9   :  { %v1357_v15 = vmax.f32 %v991_v59, 0.0 }
 0x1ca   :  { %v374_v60 = vpop.f32.mrf.mxu1 }
 0x1cb   :  { %v1361_v17 = vmax.f32 %v374_v60, 0.0 }
 0x1cc   :  { %v994_v61 = vpop.f32.mrf.mxu1 }
 0x1cd   :  { %v1349_v11 = vmax.f32 %v994_v61, 0.0 }
 0x1ce   :  { %v384_v62 = vpop.f32.mrf.mxu1 }
 0x1cf   :  { %v1353_v13 = vmax.f32 %v384_v62, 0.0 }
 0x1d0   :  { %v997_v63 = vpop.f32.mrf.mxu1 }
 0x1d1   :  { %v1343_v4 = vmax.f32 %v997_v63, 0.0 }
 0x1d2   :  { %v394_v8 = vpop.f32.mrf.mxu1 }
 0x1d3   :  { %v1345_v9 = vmax.f32 %v394_v8, 0.0  ;;  %998 = vmatprep.subr.mxu0 %v1343_v4 }
 0x1d4   :  { %999 = vmatpush3.msra.mxu0 %v1343_v4 }
 0x1d5   :  { %1000 = vmatprep.subr.mxu0 %v1345_v9 }
 0x1d6   :  { %1001 = vmatpush3.msra.mxu0 %v1345_v9 }
 0x1d7   :  { %1002 = vmatprep.subr.mxu0 %v1349_v11 }
 0x1d8   :  { %1003 = vmatpush3.msra.mxu0 %v1349_v11 }
 0x1d9   :  { %1004 = vmatprep.subr.mxu0 %v1353_v13 }
 0x1da   :  { %1005 = vmatpush3.msra.mxu0 %v1353_v13 }
 0x1db   :  { %1006 = vmatprep.subr.mxu0 %v1357_v15 }
 0x1dc   :  { %1007 = vmatpush3.msra.mxu0 %v1357_v15 }
 0x1dd   :  { %1008 = vmatprep.subr.mxu0 %v1361_v17 }
 0x1de   :  { %1009 = vmatpush3.msra.mxu0 %v1361_v17 }
 0x1df   :  { %1010 = vmatprep.subr.mxu0 %v1365_v16 }
 0x1e0   :  { %1011 = vmatpush3.msra.mxu0 %v1365_v16 }
 0x1e1   :  { %1012 = vmatprep.subr.mxu0 %v1369_v14 }
 0x1e2   :  { %1013 = vmatpush3.msra.mxu0 %v1369_v14 }
 0x1e3   :  { %1014 = vmatprep.subr.mxu0 %v1373_v18 }
 0x1e4   :  { %1015 = vmatpush3.msra.mxu0 %v1373_v18 }
 0x1e5   :  { %1016 = vmatprep.subr.mxu0 %v1377_v19 }
 0x1e6   :  { %1017 = vmatpush3.msra.mxu0 %v1377_v19 }
 0x1e7   :  { %1018 = vmatprep.subr.mxu0 %v408_v12 }
 0x1e8   :  { %1019 = vmatpush3.msra.mxu0 %v408_v12 }
 0x1e9   :  { %1020 = vmatprep.subr.mxu0 %v407_v10 }
 0x1ea   :  { %1021 = vmatpush3.msra.mxu0 %v407_v10 }
 0x1eb   :  { %1022 = vmatprep.subr.mxu0 %v406_v20 }
 0x1ec   :  { %1023 = vmatpush3.msra.mxu0 %v406_v20 }
 0x1ed   :  { %1024 = vmatprep.subr.mxu0 %v405_v21 }
 0x1ee   :  { %1025 = vmatpush3.msra.mxu0 %v405_v21 }
 0x1ef   :  { %1026 = vmatprep.subr.mxu0 %v404_v7 }
 0x1f0   :  { %1027 = vmatpush3.msra.mxu0 %v404_v7 }
 0x1f1   :  { %1028 = vmatprep.subr.mxu0 %v403_v6 }
 0x1f2   :  { %1029 = vmatpush3.msra.mxu0 %v403_v6 }
 0x1f3   :  { %1031 = vmatmul.mubr.f32.vlgmr.msra.gmra.mxu0 %v1243_v28  ;;  %v75_v28 = vld [vmem:[#allocation2 + $0x188] sm:$0xff] }
 0x1f4   :  { %1033 = vmatprep.mubr.f32.mxu0 %v1246_v30  ;;  %1082 = vmatprep.subr.mxu1 %v75_v28  ;;  %v74_v30 = vld [vmem:[#allocation2 + $0x180] sm:$0xff] }
 0x1f5   :  { %1083 = vmatpush3.msra.mxu1 %v75_v28 }
 0x1f6   :  { %1084 = vmatprep.subr.mxu1 %v74_v30 }
 0x1f7   :  { %1034 = vmatmul.mubr.f32.gmra.mxu0 %v1251_v32  ;;  %1085 = vmatpush3.msra.mxu1 %v74_v30 }
 0x1f8   :  { %1036 = vmatprep.mubr.f32.mxu0 %v1253_v34 }
 0x1fb   :  { %1037 = vmatmul.mubr.f32.gmra.mxu0 %v1257_v35 }
 0x1fc   :  { %1039 = vmatprep.mubr.f32.mxu0 %v1259_v36 }
 0x1ff   :  { %1040 = vmatmul.mubr.f32.gmra.mxu0 %v1263_v37 }
 0x200   :  { %1042 = vmatprep.mubr.f32.mxu0 %v1265_v38 }
 0x203   :  { %1043 = vmatmul.mubr.f32.gmra.mxu0 %v1269_v39 }
 0x204   :  { %1045 = vmatprep.mubr.f32.mxu0 %v1271_v40 }
 0x207   :  { %1046 = vmatmul.mubr.f32.gmra.mxu0 %v1275_v41 }
 0x208   :  { %1048 = vmatprep.mubr.f32.mxu0 %v1277_v42 }
 0x20b   :  { %1049 = vmatmul.mubr.f32.gmra.mxu0 %v1281_v43 }
 0x20c   :  { %1051 = vmatprep.mubr.f32.mxu0 %v1283_v44 }
 0x20f   :  { %1052 = vmatmul.mubr.f32.gmra.mxu0 %v1287_v45 }
 0x2b3   :  { %v1032_v32 = vpop.f32.mrf.mxu0 }
 0x2b4   :  { %v565_v36 = vsel %vm1291_vm2, %v404_v7, %v1032_v32 }
 0x2b5   :  { %v485_v34 = vpop.f32.mrf.mxu0 }
 0x2b6   :  { %v564_v35 = vsel %vm1291_vm2, %v403_v6, %v485_v34 }
 0x2b7   :  { %v1035_v37 = vpop.f32.mrf.mxu0  ;;  %1086 = vmatprep.mubr.f32.mxu1 %v564_v35 }
 0x2b8   :  { %1087 = vmatmul.mubr.f32.vlgmr.msra.gmra.mxu1 %v565_v36  ;;  %v567_v41 = vsel %vm1291_vm2, %v406_v20, %v1035_v37 }
 0x2b9   :  { %v495_v38 = vpop.f32.mrf.mxu0 }
 0x2ba   :  { %v566_v39 = vsel %vm1291_vm2, %v405_v21, %v495_v38 }
 0x2bb   :  { %v1038_v40 = vpop.f32.mrf.mxu0  ;;  %1089 = vmatprep.mubr.f32.mxu1 %v566_v39 }
 0x2bc   :  { %1090 = vmatmul.mubr.f32.gmra.mxu1 %v567_v41  ;;  %v569_v45 = vsel %vm1291_vm2, %v408_v12, %v1038_v40 }
 0x2bd   :  { %v505_v42 = vpop.f32.mrf.mxu0 }
 0x2be   :  { %v568_v43 = vsel %vm1291_vm2, %v407_v10, %v505_v42 }
 0x2bf   :  { %v1041_v44 = vpop.f32.mrf.mxu0  ;;  %1092 = vmatprep.mubr.f32.mxu1 %v568_v43 }
 0x2c0   :  { %1093 = vmatmul.mubr.f32.gmra.mxu1 %v569_v45  ;;  %v571_v3 = vsel %vm1291_vm2, %v1373_v18, %v1041_v44 }
 0x2c1   :  { %v515_v22 = vpop.f32.mrf.mxu0 }
 0x2c2   :  { %v570_v5 = vsel %vm1291_vm2, %v1377_v19, %v515_v22 }
 0x2c3   :  { %v1044_v23 = vpop.f32.mrf.mxu0  ;;  %1095 = vmatprep.mubr.f32.mxu1 %v570_v5 }
 0x2c4   :  { %1096 = vmatmul.mubr.f32.gmra.mxu1 %v571_v3  ;;  %v573_v1 = vsel %vm1291_vm2, %v1365_v16, %v1044_v23 }
 0x2c5   :  { %v525_v24 = vpop.f32.mrf.mxu0 }
 0x2c6   :  { %v572_v2 = vsel %vm1291_vm2, %v1369_v14, %v525_v24 }
 0x2c7   :  { %v1047_v25 = vpop.f32.mrf.mxu0  ;;  %1098 = vmatprep.mubr.f32.mxu1 %v572_v2 }
 0x2c8   :  { %1099 = vmatmul.mubr.f32.gmra.mxu1 %v573_v1  ;;  %v575_v29 = vsel %vm1291_vm2, %v1357_v15, %v1047_v25 }
 0x2c9   :  { %v535_v26 = vpop.f32.mrf.mxu0 }
 0x2ca   :  { %v574_v0 = vsel %vm1291_vm2, %v1361_v17, %v535_v26 }
 0x2cb   :  { %v1050_v27 = vpop.f32.mrf.mxu0  ;;  %1101 = vmatprep.mubr.f32.mxu1 %v574_v0 }
 0x2cc   :  { %1102 = vmatmul.mubr.f32.gmra.mxu1 %v575_v29  ;;  %v577_v47 = vsel %vm1291_vm2, %v1349_v11, %v1050_v27 }
 0x2cd   :  { %v545_v31 = vpop.f32.mrf.mxu0 }
 0x2ce   :  { %v576_v33 = vsel %vm1291_vm2, %v1353_v13, %v545_v31 }
 0x2cf   :  { %v1053_v46 = vpop.f32.mrf.mxu0  ;;  %1104 = vmatprep.mubr.f32.mxu1 %v576_v33 }
 0x2d0   :  { %1105 = vmatmul.mubr.f32.gmra.mxu1 %v577_v47  ;;  %v579_v50 = vsel %vm1291_vm2, %v1343_v4, %v1053_v46 }
 0x2d1   :  { %v555_v48 = vpop.f32.mrf.mxu0 }
 0x2d2   :  { %v578_v49 = vsel %vm1291_vm2, %v1345_v9, %v555_v48 }
 0x2d3   :  { %1107 = vmatprep.mubr.f32.mxu1 %v578_v49 }
 0x2d4   :  { %1108 = vmatmul.mubr.f32.gmra.mxu1 %v579_v50 }
 0x378   :  { %v1088_v52 = vpop.f32.mrf.mxu1 }
 0x379   :  { %726 = vst [vmem:[#allocation5 + $0x8] sm:$0xff] %v1088_v52 }
 0x37a   :  { %v646_v53 = vpop.f32.mrf.mxu1 }
 0x37b   :  { %725 = vst [vmem:[#allocation5] sm:$0xff] %v646_v53 }
 0x37c   :  { %v1091_v54 = vpop.f32.mrf.mxu1 }
 0x37d   :  { %728 = vst [vmem:[#allocation5 + $0x18] sm:$0xff] %v1091_v54 }
 0x37e   :  { %v656_v55 = vpop.f32.mrf.mxu1 }
 0x37f   :  { %727 = vst [vmem:[#allocation5 + $0x10] sm:$0xff] %v656_v55 }
 0x380   :  { %v1094_v56 = vpop.f32.mrf.mxu1 }
 0x381   :  { %730 = vst [vmem:[#allocation5 + $0x28] sm:$0xff] %v1094_v56 }
 0x382   :  { %v666_v57 = vpop.f32.mrf.mxu1 }
 0x383   :  { %729 = vst [vmem:[#allocation5 + $0x20] sm:$0xff] %v666_v57 }
 0x384   :  { %v1097_v58 = vpop.f32.mrf.mxu1 }
 0x385   :  { %732 = vst [vmem:[#allocation5 + $0x38] sm:$0xff] %v1097_v58 }
 0x386   :  { %v676_v59 = vpop.f32.mrf.mxu1 }
 0x387   :  { %731 = vst [vmem:[#allocation5 + $0x30] sm:$0xff] %v676_v59 }
 0x388   :  { %v1100_v60 = vpop.f32.mrf.mxu1 }
 0x389   :  { %734 = vst [vmem:[#allocation5 + $0x48] sm:$0xff] %v1100_v60 }
 0x38a   :  { %v686_v51 = vpop.f32.mrf.mxu1 }
 0x38b   :  { %733 = vst [vmem:[#allocation5 + $0x40] sm:$0xff] %v686_v51 }
 0x38c   :  { %v1103_v61 = vpop.f32.mrf.mxu1 }
 0x38d   :  { %736 = vst [vmem:[#allocation5 + $0x58] sm:$0xff] %v1103_v61 }
 0x38e   :  { %v696_v62 = vpop.f32.mrf.mxu1 }
 0x38f   :  { %735 = vst [vmem:[#allocation5 + $0x50] sm:$0xff] %v696_v62 }
 0x390   :  { %v1106_v63 = vpop.f32.mrf.mxu1 }
 0x391   :  { %738 = vst [vmem:[#allocation5 + $0x68] sm:$0xff] %v1106_v63 }
 0x392   :  { %v706_v4 = vpop.f32.mrf.mxu1 }
 0x393   :  { %737 = vst [vmem:[#allocation5 + $0x60] sm:$0xff] %v706_v4 }
 0x394   :  { %v1109_v8 = vpop.f32.mrf.mxu1 }
 0x395   :  { %740 = vst [vmem:[#allocation5 + $0x78] sm:$0xff] %v1109_v8 }
 0x396   :  { %v716_v9 = vpop.f32.mrf.mxu1 }
 0x397   :  { %739 = vst [vmem:[#allocation5 + $0x70] sm:$0xff] %v716_v9 }
 0x398   :  { %1145 = shalt.err (!%p1142_p9)
}
 0x399   :  { %752 = dma.vmem_to_hbm [thread:$0]  %s747_s13, 2048, %s1447_s1, [#allocation4], %s1159_s9, %s1159_s9, %s1160_s10  }
 0x39a   :  { %1156 = dma.done.wait [#allocation4], 2048  }
 0x39b   :  { %1157 = vsyncadd [#allocation4], 4294965248 }
 0x39c   :  { %756 = vsyncpa [#allocation3], 1 }
 0x39d   :  { %757 = vsyncpa [#allocation4], 1 }

</bundles_post_ra>
